<compile_context>
chip_gen: v5e
topology: v5e:2x2
jax: 0.10.0
libtpu: 0.0.40
codegen_flags: <defaults>
</compile_context>

<pallas_src>
import jax
import jax.numpy as jnp
from jax.experimental import pallas as pl
from jax.experimental.pallas import tpu as pltpu


def _cdiv(a, b):
    return -(-a // b)


def _has_two_tensorcores():
    """True on v7x-class parts (2 TensorCores per chip share the grid)."""
    try:
        kind = jax.devices()[0].device_kind.lower()
    except Exception:
        return False
    return ("v7" in kind) or ("7x" in kind)


def _pick_spatial_tile(HW, dual_tc):
    """Pick a lane-multiple spatial tile TM (static Python int).

    Minimizes padded-lane waste subject to:
      * TM is a multiple of 128 (lane-dense, unmasked stores),
      * per-block width does not drop below 512 lanes on dual-TC parts
        (256 on single-TC) for non-tiny inputs,
      * on dual-TC parts the block count is even so both cores get work,
      * at least 2 blocks whenever possible (keeps DMA/compute overlap).
    HW = 3136  ->  TM = 640 (5 blocks) single-TC,  TM = 1664 (2 blocks) dual-TC.
    """
    if HW <= 128:
        return HW                              # tiny spatial extent: one block
    lanes = 128 * _cdiv(HW, 128)               # padded single-block lane width
    if lanes < 512:
        min_tm = 128
    elif dual_tc:
        min_tm = 512 if lanes >= 1024 else 256
    else:
        min_tm = 256
    counts = (2, 4, 6, 8) if dual_tc else (2, 3, 4, 5, 6)
    best_tm, best_key = lanes, None            # fallback: one full padded block
    for nb in counts:
        tm = max(128 * _cdiv(_cdiv(HW, nb), 128), min_tm)
        grid_m = _cdiv(HW, tm)
        if dual_tc and grid_m % 2:             # keep the two TensorCores balanced
            continue
        key = (grid_m * tm - HW, grid_m)       # (padding waste, step count)
        if best_key is None or key < best_key:
            best_key, best_tm = key, tm
    return best_tm


def _add_conv1x1_kernel(a_ref, b_ref, w_ref, o_ref):
    # a_ref, b_ref: (1, Cin, TM); w_ref: (Cout, Cin); o_ref: (1, Cout, TM)
    x = a_ref[0] + b_ref[0]                    # VPU add, (Cin, TM)
    o_ref[0] = jnp.dot(                        # MXU matmul, (Cout, TM)
        w_ref[...], x, preferred_element_type=jnp.float32
    ).astype(o_ref.dtype)


def add_conv1x1_flat(a, b, w):
    """Fused add + 1x1 conv on the flattened layout.

    a, b: (N, Cin, HW) float32;  w: (Cout, Cin) float32.
    Returns (N, Cout, HW).  Use this form to keep the lane-dense layout
    flowing through a larger graph (avoids NCHW relayout copies).
    """
    N, Cin, HW = a.shape
    Cout = w.shape[0]

    TM = _pick_spatial_tile(HW, _has_two_tensorcores())
    grid_m = _cdiv(HW, TM)

    return pl.pallas_call(
        _add_conv1x1_kernel,
        out_shape=jax.ShapeDtypeStruct((N, Cout, HW), a.dtype),
        # Spatial axis first so the megacore split lands on it even when N==1.
        grid=(grid_m, N),
        in_specs=[
            pl.BlockSpec((1, Cin, TM), lambda j, n: (n, 0, j)),
            pl.BlockSpec((1, Cin, TM), lambda j, n: (n, 0, j)),
            # Weight: constant index_map -> fetched once, resident in VMEM.
            pl.BlockSpec((Cout, Cin), lambda j, n: (0, 0)),
        ],
        out_specs=pl.BlockSpec((1, Cout, TM), lambda j, n: (n, 0, j)),
        compiler_params=pltpu.CompilerParams(
            dimension_semantics=("parallel", "parallel"),
        ),
        cost_estimate=pl.CostEstimate(
            flops=2 * N * HW * Cin * Cout,
            transcendentals=0,
            bytes_accessed=4 * (2 * N * Cin * HW + Cout * Cin + N * Cout * HW),
        ),
    )(a, b, w)


def add_conv1x1(x82, x67, weight):
    """x82, x67: (N, Cin, H, W) f32; weight: (Cout, Cin, 1, 1) f32.

    Returns (N, Cout, H, W), matching Conv2d(Cin, Cout, 1, bias=False)(x82+x67).
    NOTE: the reshapes below change the (8,128)-tiled physical layout; in a
    full NCHW graph prefer `add_conv1x1_flat` with the (N, C, H*W) view carried
    through neighboring layers to avoid HBM relayout copies at this boundary.
    """
    N, Cin, H, W = x82.shape
    Cout = weight.shape[0]
    HW = H * W

    a = x82.reshape(N, Cin, HW)
    b = x67.reshape(N, Cin, HW)
    w = weight.reshape(Cout, Cin)              # natural (Cout, Cin), no transpose

    out = add_conv1x1_flat(a, b, w)
    return out.reshape(N, Cout, H, W)


if __name__ == "__main__":
    key = jax.random.PRNGKey(0)
    k1, k2, k3 = jax.random.split(key, 3)

    # Shapes implied by the module: Conv2d(48, 288, 1x1) on (1, 48, 56, 56).
    N, Cin, H, W = 1, 48, 56, 56
    Cout = 288

    x82 = jax.random.normal(k1, (N, Cin, H, W), dtype=jnp.float32)
    x67 = jax.random.normal(k2, (N, Cin, H, W), dtype=jnp.float32)
    bound = 1.0 / (Cin ** 0.5)                 # kaiming-uniform-like 1x1 conv init
    weight = jax.random.uniform(
        k3, (Cout, Cin, 1, 1), dtype=jnp.float32, minval=-bound, maxval=bound
    )

    out = jax.block_until_ready(add_conv1x1(x82, x67, weight))

    # Reference: add + 1x1 conv == channel matmul (full-precision reference).
    ref = jnp.einsum(
        "nchw,oc->nohw", x82 + x67, weight.reshape(Cout, Cin),
        precision=jax.lax.Precision.HIGHEST,
    )
    assert out.shape == (N, Cout, H, W), out.shape
    assert jnp.allclose(out, ref, atol=2e-3, rtol=2e-3), float(
        jnp.max(jnp.abs(out - ref))
    )

    print("KERNEL_OK")
</pallas_src>

<mosaic_0001>
module attributes {stable_mosaic.version = 11 : i64} {
  func.func @_add_conv1x1_kernel(%arg0: i32, %arg1: i32, %arg2: memref<1x48x640xf32, #tpu.memory_space<vmem>>, %arg3: memref<1x48x640xf32, #tpu.memory_space<vmem>>, %arg4: memref<288x48xf32, #tpu.memory_space<vmem>>, %arg5: memref<1x288x640xf32, #tpu.memory_space<vmem>>) attributes {dimension_semantics = [#tpu.dimension_semantics<parallel>, #tpu.dimension_semantics<parallel>], iteration_bounds = array<i64: 5, 1>, scalar_prefetch = 0 : i64, scratch_operands = 0 : i64, tpu.core_type = #tpu.core_type<tc>, window_params = [{transform_indices = @transform_0, window_bounds = array<i64: 1, 48, 640>}, {transform_indices = @transform_1, window_bounds = array<i64: 1, 48, 640>}, {pipeline_mode = #tpu.pipeline_mode<synchronous>, transform_indices = @transform_2, window_bounds = array<i64: 288, 48>}, {transform_indices = @transform_3, window_bounds = array<i64: 1, 288, 640>}]} {
    %c0 = arith.constant 0 : index
    %c0_0 = arith.constant 0 : index
    %c0_1 = arith.constant 0 : index
    %0 = vector.load %arg2[%c0, %c0_0, %c0_1] : memref<1x48x640xf32, #tpu.memory_space<vmem>>, vector<1x48x640xf32>
    %1 = vector.shape_cast %0 : vector<1x48x640xf32> to vector<48x640xf32>
    %c0_2 = arith.constant 0 : index
    %c0_3 = arith.constant 0 : index
    %c0_4 = arith.constant 0 : index
    %2 = vector.load %arg3[%c0_2, %c0_3, %c0_4] : memref<1x48x640xf32, #tpu.memory_space<vmem>>, vector<1x48x640xf32>
    %3 = vector.shape_cast %2 : vector<1x48x640xf32> to vector<48x640xf32>
    %4 = arith.addf %1, %3 : vector<48x640xf32>
    %c0_5 = arith.constant 0 : index
    %c0_6 = arith.constant 0 : index
    %5 = vector.load %arg4[%c0_5, %c0_6] : memref<288x48xf32, #tpu.memory_space<vmem>>, vector<288x48xf32>
    %cst = arith.constant dense<0.000000e+00> : vector<288x640xf32>
    %6 = tpu.matmul %5, %4, %cst {dimension_numbers = #tpu.dot_dimension_numbers<[1], [0], [0], [1], [0, 0, 1, 1], [], []>} : vector<288x48xf32>, vector<48x640xf32>, vector<288x640xf32> -> vector<288x640xf32>
    %c0_7 = arith.constant 0 : index
    %c0_8 = arith.constant 0 : index
    %c0_9 = arith.constant 0 : index
    %7 = vector.load %arg5[%c0_7, %c0_8, %c0_9] : memref<1x288x640xf32, #tpu.memory_space<vmem>>, vector<1x288x640xf32>
    %8 = vector.shape_cast %7 : vector<1x288x640xf32> to vector<288x640xf32>
    %9 = vector.shape_cast %6 : vector<288x640xf32> to vector<1x288x640xf32>
    tpu.vector_store %arg5[%c0_7, %c0_8, %c0_9], %9 {strides = array<i32>} : memref<1x288x640xf32, #tpu.memory_space<vmem>>, vector<1x288x640xf32>,
    return
  }
  func.func @transform_0(%arg0: i32, %arg1: i32) -> (i32, i32, i32) {
    %c0_i32 = arith.constant 0 : i32
    %c0_i32_0 = arith.constant 0 : i32
    return %arg1, %c0_i32, %arg0 : i32, i32, i32
  }
  func.func @transform_1(%arg0: i32, %arg1: i32) -> (i32, i32, i32) {
    %c0_i32 = arith.constant 0 : i32
    %c0_i32_0 = arith.constant 0 : i32
    return %arg1, %c0_i32, %arg0 : i32, i32, i32
  }
  func.func @transform_2(%arg0: i32, %arg1: i32) -> (i32, i32) {
    %c0_i32 = arith.constant 0 : i32
    %c0_i32_0 = arith.constant 0 : i32
    %c0_i32_1 = arith.constant 0 : i32
    return %c0_i32, %c0_i32_0 : i32, i32
  }
  func.func @transform_3(%arg0: i32, %arg1: i32) -> (i32, i32, i32) {
    %c0_i32 = arith.constant 0 : i32
    %c0_i32_0 = arith.constant 0 : i32
    return %arg1, %c0_i32, %arg0 : i32, i32, i32
  }
}

</mosaic_0001>

<bundles_post_ra>
// kernel: tpu_custom_call.1
= control target key start
LH: loop header
LB: loop body
LE: loop exit
PB: predicated region body
PF: predicated region fallthrough
CT: control target
= control target key end

     0   :  { %s2790_s0 = inlined_call_operand.hbm [shape: f32[1,48,3136], index: 0, kind: input, shape index: {}]   ;;  %s2791_s1 = inlined_call_operand.hbm [shape: f32[1,48,3136], index: 1, kind: input, shape index: {}]   ;;  %s2792_s2 = inlined_call_operand.vmem [shape: f32[288,48], index: 2, kind: input, shape index: {}]   ;;  %s2793_s3 = inlined_call_operand.hbm [shape: f32[1,288,3136], index: 3, kind: output, shape index: {}]  }
   0x1   :  { %2795 = sst [smem:[#allocation12_spill]] %s2790_s0 }
   0x2   :  { %8 = vsyncpa [#allocation3], 0 }
   0x3   :  { %10 = vsyncpa [#allocation3 + $0x1], 0 }
   0x4   :  { %11 = vsyncpa [#allocation6], 0 }
   0x5   :  { %13 = vsyncpa [#allocation6 + $0x1], 0 }
   0x6   :  { %14 = vsyncpa [#allocation4], 0 }
   0x7   :  { %16 = vsyncpa [#allocation4 + $0x1], 0  ;;  %s1891_s12 = smov 0   ;;  %s1893_s13 = smov 0  }
   0x8   :  { %s1895_s14 = smov 0   ;;  %s1897_s15 = smov 0  }
   0x9   :  { %s1899_s16 = smov 0   ;;  %s1901_s17 = smov 0  }
   0xa LB: > { %s1429_s18 = sadd.s32 4294967295, %s1863_s17   ;;  %s1430_s19 = sadd.s32 4294967294, %s1863_s17   ;;  %s1863_s17 = sphi %s1901_s17, %s22_s17   ;;  %s1859_s16 = sphi %s1899_s16, %s2808_s16   ;;  %s1855_s15 = sphi %s1897_s15, %s2807_s15   ;;  %s1851_s14 = sphi %s1895_s14, %s2806_s14   ;;  %s1847_s13 = sphi %s1893_s13, %s2805_s13   ;;  %s1843_s12 = sphi %s1891_s12, %s2804_s12  }
   0xb   : > { %s34_s20 = sadd.s32 1, %s1859_s16  ;;  %s43_s21 = sadd.s32 1, %s1851_s14 }
   0xc   : > { %p36_p0 = scmp.ge.s32.totalorder %s34_s20, 5  ;;  %p50_p1 = scmp.ne.s32.totalorder %s1851_s14, %s1847_s13 }
   0xd   : > { %p51_p2 = scmp.eq.s32.totalorder %s1863_s17, 0  ;;  %p56_p3 = scmp.ne.s32.totalorder %s1847_s13, %s1843_s12 }
   0xe   : > { %s2810_s20 = smov (%p36_p0, %s34_s20), 0  ;;  %p57_p5 = scmp.eq.s32.totalorder %s1429_s18, 0 }
   0xf   : > { %2796 = sst [smem:[#allocation11_spill]] %s2810_s20  ;;  %p1932_p4 = por %p51_p2, %p50_p1 }
  0x10   : > { %s39_s23 = ssub.s32 %s1859_s16, %s2810_s20  ;;  %p131_p6 = scmp.eq.s32.totalorder %s1429_s18, 4 }
  0x11   : > { %p41_p7 = scmp.eq.s32.totalorder %s39_s23, 0  ;;  %p1938_p8 = por %p57_p5, %p56_p3 }
  0x12   : > { %p1942_p9 = por %p131_p6, %p50_p1  ;;  %p137_p10 = scmp.eq.s32.totalorder %s1430_s19, 4 }
  0x13   : > { %s1947_s26 = scalar_select %p41_p7, %s1851_s14, %s43_s21  }
  0x14   : > { %p1949_p11 = por %p137_p10, %p56_p3  ;;  %p1661_p12 = scmp.lt.s32.totalorder %s1863_s17, 5 }
  0x15   : > { %s1955_s28 = sand.u32 1, %s1851_s14   ;;  %s1619_s30 = smul.u32 40, %s1859_s16 }
  0x16   : > { %s1640_s29 = smul.u32 240, %s1955_s28  ;;  %p1961_p13 = pnand %p1661_p12, %p1932_p4 }
  0x17   : > { %s2802_s0 = sld [smem:[#allocation12_spill]]  ;;  %s161_s11 = scalar_lea.sflag [#allocation3], %s1955_s28 }
  0x18   : > { %s164_s8 = scalar_lea.vmem [#allocation2], %s1640_s29  ;;  %s1865_s18 = smov 3200  }
  0x19   : > { %s174_s9 = sshll.u32 %s164_s8, 4  ;;  %s1866_s19 = smov 640   ;;  %s175_s9 = int_to_ptr.vmem [resolvable:$true] %s174_s9 }
  0x1a   : > { %s1867_s21 = smov 40   ;;  %p1435_p0 = scmp.ge.s32.totalorder %s1863_s17, 1 }
  0x1b   : > { %p206_p1 = scmp.lt.s32.totalorder %s1863_s17, 6  ;;  %s195_s5 = scalar_lea.hbm %s2791_s1, %s1619_s30 }
  0x1c   : > { %s196_s6 = sshll.u32 %s195_s5, 4  ;;  %s188_s8 = scalar_lea.vmem [#allocation5], %s1640_s29  ;;  %s197_s6 = int_to_ptr.hbm [resolvable:$true] %s196_s6 }
  0x1d   : > { %s171_s7 = scalar_lea.hbm %s2802_s0, %s1619_s30  ;;  %p207_p2 = pnand %p1435_p0, %p206_p1 }
  0x1e   : > { %s172_s10 = sshll.u32 %s171_s7, 4  ;;  %s198_s7 = sshll.u32 %s188_s8, 4  ;;  %s173_s10 = int_to_ptr.hbm [resolvable:$true] %s172_s10  ;;  %s199_s7 = int_to_ptr.vmem [resolvable:$true] %s198_s7 }
  0x1f   : > { %1653 = dma.hbm_to_vmem [thread:$0]  (!%p1961_p13), %s173_s10, 3840, %s175_s9, %s161_s11, %s1865_s18, %s1866_s19, %s1867_s21  }
  0x20   : > { %s185_s0 = scalar_lea.sflag [#allocation6], %s1955_s28  ;;  %210 = sbr.rel (%p207_p2) target bundleno = 546 (0x222), region = 32 }
  0x21   : > { %1656 = dma.hbm_to_vmem [thread:$0]  (!%p1961_p13), %s197_s6, 3840, %s199_s7, %s185_s0, %s1865_s18, %s1866_s19, %s1867_s21  }
  0x22   : > { %s1980_s20 = sand.u32 (!%p207_p2), 1, %s1847_s13  }
  0x23   : > { %s1642_s9 = smul.u32 (!%p207_p2), 240, %s1980_s20  ;;  %s213_s10 = scalar_lea.sflag (!%p207_p2), [#allocation3], %s1980_s20 }
  0x25   : > { %s1984_s11 = scalar_lea.vmem [#allocation2], %s1642_s9 }
  0x26   : > { %1830 = dma.done.wait (%p1938_p8), %s213_s10, 3840  }
  0x27   : > { %1832 = vsyncadd (%p1938_p8), %s213_s10, 4294963456  ;;  %s223_s28 = scalar_lea.sflag [#allocation6], %s1980_s20  ;;  %s1991_s0 = scalar_lea.vmem [#allocation5], %s1642_s9 }
  0x28   : > { %1834 = dma.done.wait (%p1938_p8), %s223_s28, 3840  }
  0x29   : > { %1836 = vsyncadd (%p1938_p8), %s223_s28, 4294963456  ;;  %v283_v0 = vld [vmem:[%s1984_s11 + $0xc8] sm:$0xff]  ;;  %v278_v2 = vld [vmem:[%s1984_s11 + $0xa0] sm:$0xff]  ;;  %vm384_vm0 = vcmask 392192   ;;  %s1643_s18 = smul.u32 1440, %s1980_s20  ;;  %s1797_s10 = scalar_lea.hbm %s2793_s3, 7200 }
  0x2a   : > { %v313_v1 = vld [vmem:[%s1991_s0 + $0xc8] sm:$0xff]  ;;  %v308_v4 = vld [vmem:[%s1991_s0 + $0xa0] sm:$0xff]  ;;  %v273_v5 = vld [vmem:[%s1984_s11 + $0x78] sm:$0xff]  ;;  %s1621_s21 = smul.u32 40, %s1855_s15  ;;  %s1299_s15 = scalar_lea.sflag [#allocation4], %s1980_s20 }
  0x2b   : > { %v343_v3 = vadd.f32 %v313_v1, %v283_v0  ;;  %v303_v6 = vld [vmem:[%s1991_s0 + $0x78] sm:$0xff]  ;;  %v338_v7 = vadd.f32 %v308_v4, %v278_v2  ;;  %v268_v8 = vld [vmem:[%s1984_s11 + $0x50] sm:$0xff]  ;;  %v263_v11 = vld [vmem:[%s1984_s11 + $0x28] sm:$0xff]  ;;  %s2348_s19 = scalar_lea.vmem [#allocation7], %s1643_s18 }
  0x2c   : > { %v298_v9 = vld [vmem:[%s1991_s0 + $0x50] sm:$0xff]  ;;  %v333_v10 = vadd.f32 %v303_v6, %v273_v5  ;;  %v293_v12 = vld [vmem:[%s1991_s0 + $0x28] sm:$0xff]  ;;  %v258_v14 = vld [vmem:[%s1984_s11] sm:$0xff]  ;;  %s1312_s5 = scalar_lea.hbm %s2793_s3, %s1621_s21  ;;  %s1313_s6 = sshll.u32 %s2348_s19, 4  ;;  %s1314_s6 = int_to_ptr.vmem [resolvable:$true] %s1313_s6 }
  0x2d   : > { %1623 = vmatpush.msra.mxu2 %v343_v3  ;;  %1624 = vmatpush.msra.mxu3 %v343_v3  ;;  %v328_v13 = vadd.f32 %v298_v9, %v268_v8  ;;  %v288_v15 = vld [vmem:[%s1991_s0] sm:$0xff]  ;;  %v323_v16 = vadd.f32 %v293_v12, %v263_v11  ;;  %v285_v17 = vld [vmem:[%s1984_s11 + $0xd8] sm:$0xff]  ;;  %v284_v24 = vld [vmem:[%s1984_s11 + $0xd0] sm:$0xff]  ;;  %s1315_s8 = sshll.u32 %s1312_s5, 4  ;;  %s1316_s8 = int_to_ptr.hbm [resolvable:$true] %s1315_s8 }
  0x2e   : > { %503 = vmatpush.msra.mxu0 %v343_v3  ;;  %1622 = vmatpush.msra.mxu1 %v343_v3  ;;  %v315_v18 = vld [vmem:[%s1991_s0 + $0xd8] sm:$0xff]  ;;  %v286_v19 = vld [vmem:[%s1984_s11 + $0xe0] sm:$0xff]  ;;  %v318_v21 = vadd.f32 %v288_v15, %v258_v14  ;;  %v314_v25 = vld [vmem:[%s1991_s0 + $0xd0] sm:$0xff] }
  0x2f   : > { %1626 = vmatpush.msra.mxu2 %v338_v7  ;;  %1627 = vmatpush.msra.mxu3 %v338_v7  ;;  %v316_v20 = vld [vmem:[%s1991_s0 + $0xe0] sm:$0xff]  ;;  %v2021_v23 = vld [vmem:[%s2792_s2 + $0xd8] sm:$0xff]  ;;  %v345_v27 = vadd.f32 %v315_v18, %v285_v17  ;;  %v280_v30 = vld [vmem:[%s1984_s11 + $0xb0] sm:$0xff]  ;;  %v344_v40 = vadd.f32 %v314_v25, %v284_v24 }
  0x30   : > { %504 = vmatpush.msra.mxu0 %v338_v7  ;;  %1625 = vmatpush.msra.mxu1 %v338_v7  ;;  %v2016_v22 = vld [vmem:[%s2792_s2 + $0x90] sm:$0xff]  ;;  %v287_v26 = vld [vmem:[%s1984_s11 + $0xe8] sm:$0xff]  ;;  %v346_v28 = vadd.f32 %v316_v20, %v286_v19  ;;  %v2032_v32 = vld [vmem:[%s2792_s2] sm:$0xff] }
  0x31   : > { %1629 = vmatpush.msra.mxu2 %v333_v10  ;;  %1630 = vmatpush.msra.mxu3 %v333_v10  ;;  %v317_v29 = vld [vmem:[%s1991_s0 + $0xe8] sm:$0xff]  ;;  %v310_v31 = vld [vmem:[%s1991_s0 + $0xb0] sm:$0xff]  ;;  %v281_v34 = vld [vmem:[%s1984_s11 + $0xb8] sm:$0xff] }
  0x32   : > { %505 = vmatpush.msra.mxu0 %v333_v10  ;;  %1628 = vmatpush.msra.mxu1 %v333_v10  ;;  %v2037_v33 = vld [vmem:[%s2792_s2 + $0x48] sm:$0xff]  ;;  %v282_v38 = vld [vmem:[%s1984_s11 + $0xc0] sm:$0xff]  ;;  %v347_v41 = vadd.f32 %v317_v29, %v287_v26  ;;  %v276_v44 = vld [vmem:[%s1984_s11 + $0x90] sm:$0xff]  ;;  %v340_v45 = vadd.f32 %v310_v31, %v280_v30 }
  0x33   : > { %1632 = vmatpush.msra.mxu2 %v328_v13  ;;  %1633 = vmatpush.msra.mxu3 %v328_v13  ;;  %v311_v35 = vld [vmem:[%s1991_s0 + $0xb8] sm:$0xff]  ;;  %v279_v36 = vld [vmem:[%s1984_s11 + $0xa8] sm:$0xff]  ;;  %v312_v39 = vld [vmem:[%s1991_s0 + $0xc0] sm:$0xff] }
  0x34   : > { %506 = vmatpush.msra.mxu0 %v328_v13  ;;  %1631 = vmatpush.msra.mxu1 %v328_v13  ;;  %v309_v37 = vld [vmem:[%s1991_s0 + $0xa8] sm:$0xff]  ;;  %v341_v46 = vadd.f32 %v311_v35, %v281_v34  ;;  %v306_v47 = vld [vmem:[%s1991_s0 + $0x90] sm:$0xff]  ;;  %v342_v49 = vadd.f32 %v312_v39, %v282_v38  ;;  %v274_v50 = vld [vmem:[%s1984_s11 + $0x80] sm:$0xff] }
  0x35   : > { %1635 = vmatpush.msra.mxu2 %v323_v16  ;;  %1636 = vmatpush.msra.mxu3 %v323_v16  ;;  %v275_v42 = vld [vmem:[%s1984_s11 + $0x88] sm:$0xff]  ;;  %v339_v48 = vadd.f32 %v309_v37, %v279_v36  ;;  %v304_v51 = vld [vmem:[%s1991_s0 + $0x80] sm:$0xff]  ;;  %v277_v52 = vld [vmem:[%s1984_s11 + $0x98] sm:$0xff]  ;;  %v336_v54 = vadd.f32 %v306_v47, %v276_v44 }
  0x36   : > { %507 = vmatpush.msra.mxu0 %v323_v16  ;;  %1634 = vmatpush.msra.mxu1 %v323_v16  ;;  %v305_v43 = vld [vmem:[%s1991_s0 + $0x88] sm:$0xff]  ;;  %v307_v55 = vld [vmem:[%s1991_s0 + $0x98] sm:$0xff]  ;;  %v270_v56 = vld [vmem:[%s1984_s11 + $0x60] sm:$0xff]  ;;  %v334_v61 = vadd.f32 %v304_v51, %v274_v50 }
  0x37   : > { %1638 = vmatpush.msra.mxu2 %v318_v21  ;;  %1639 = vmatpush.msra.mxu3 %v318_v21  ;;  %v335_v53 = vadd.f32 %v305_v43, %v275_v42  ;;  %v300_v57 = vld [vmem:[%s1991_s0 + $0x60] sm:$0xff]  ;;  %v271_v58 = vld [vmem:[%s1984_s11 + $0x68] sm:$0xff]  ;;  %v337_v62 = vadd.f32 %v307_v55, %v277_v52  ;;  %v269_v4 = vld [vmem:[%s1984_s11 + $0x58] sm:$0xff] }
  0x38   : > { %1454 = vmatmul.msk.f32.vlgmr.msra.gmra.mxu2 %vm384_vm0, %v2016_v22  ;;  %1463 = vmatmul.msk.f32.vlgmr.msra.gmra.mxu3 %vm384_vm0, %v2021_v23  ;;  %v2067_v59 = vld [vmem:[%s2792_s2 + $0x98] sm:$0xff]  ;;  %v2072_v60 = vld [vmem:[%s2792_s2 + $0xe0] sm:$0xff]  ;;  %v330_v0 = vadd.f32 %v300_v57, %v270_v56  ;;  %v2078_v2 = vld [vmem:[%s2792_s2 + $0x8] sm:$0xff] }
  0x39   : > { %753 = vmatpush.msrb.mxu2 %v345_v27  ;;  %878 = vmatpush.msrb.mxu3 %v346_v28  ;;  %v301_v63 = vld [vmem:[%s1991_s0 + $0x68] sm:$0xff]  ;;  %v2083_v3 = vld [vmem:[%s2792_s2 + $0x50] sm:$0xff]  ;;  %v299_v5 = vld [vmem:[%s1991_s0 + $0x58] sm:$0xff] }
  0x3a   : > { %508 = vmatpush.msra.mxu0 %v318_v21  ;;  %1637 = vmatpush.msra.mxu1 %v318_v21  ;;  %v331_v1 = vadd.f32 %v301_v63, %v271_v58  ;;  %v272_v6 = vld [vmem:[%s1984_s11 + $0x70] sm:$0xff]  ;;  %v329_v7 = vadd.f32 %v299_v5, %v269_v4  ;;  %v2105_v11 = vld [vmem:[%s2792_s2 + $0xe8] sm:$0xff]  ;;  %v2115_v13 = vld [vmem:[%s2792_s2 + $0x58] sm:$0xff] }
  0x3b   : > { %1436 = vmatmul.msk.f32.vlgmr.msra.gmra.mxu0 %vm384_vm0, %v2032_v32  ;;  %1445 = vmatmul.msk.f32.vlgmr.msra.gmra.mxu1 %vm384_vm0, %v2037_v33  ;;  %v302_v8 = vld [vmem:[%s1991_s0 + $0x70] sm:$0xff]  ;;  %v265_v14 = vld [vmem:[%s1984_s11 + $0x38] sm:$0xff]  ;;  %v266_v16 = vld [vmem:[%s1984_s11 + $0x40] sm:$0xff] }
  0x3c   : > { %628 = vmatpush.msrb.mxu1 %v344_v40  ;;  %1003 = vmatpush.msrb.mxu0 %v347_v41  ;;  %v332_v9 = vadd.f32 %v302_v8, %v272_v6  ;;  %v2100_v10 = vld [vmem:[%s2792_s2 + $0xa0] sm:$0xff]  ;;  %v2110_v12 = vld [vmem:[%s2792_s2 + $0x10] sm:$0xff]  ;;  %v295_v15 = vld [vmem:[%s1991_s0 + $0x38] sm:$0xff] }
  0x3d   : > { %754 = vmatpush.msrb.mxu2 %v340_v45  ;;  %879 = vmatpush.msrb.mxu3 %v341_v46  ;;  %v325_v17 = vadd.f32 %v295_v15, %v265_v14  ;;  %v296_v18 = vld [vmem:[%s1991_s0 + $0x40] sm:$0xff]  ;;  %v264_v20 = vld [vmem:[%s1984_s11 + $0x30] sm:$0xff]  ;;  %v267_v25 = vld [vmem:[%s1984_s11 + $0x48] sm:$0xff] }
  0x3e   : > { %629 = vmatpush.msrb.mxu1 %v339_v48  ;;  %1004 = vmatpush.msrb.mxu0 %v342_v49  ;;  %v326_v19 = vadd.f32 %v296_v18, %v266_v16  ;;  %v294_v21 = vld [vmem:[%s1991_s0 + $0x30] sm:$0xff]  ;;  %v297_v26 = vld [vmem:[%s1991_s0 + $0x48] sm:$0xff]  ;;  %v261_v36 = vld [vmem:[%s1984_s11 + $0x18] sm:$0xff] }
  0x3f   : > { %755 = vmatpush.msrb.mxu2 %v335_v53  ;;  %880 = vmatpush.msrb.mxu3 %v336_v54  ;;  %v324_v24 = vadd.f32 %v294_v21, %v264_v20  ;;  %v2136_v27 = vld [vmem:[%s2792_s2 + $0xa8] sm:$0xff]  ;;  %v2141_v28 = vld [vmem:[%s2792_s2 + $0xf0] sm:$0xff]  ;;  %v327_v29 = vadd.f32 %v297_v26, %v267_v25  ;;  %v2146_v30 = vld [vmem:[%s2792_s2 + $0x18] sm:$0xff] }
  0x40   : > { %1455 = vmatmul.msk.f32.gmra.mxu2 %vm384_vm0, %v2067_v59  ;;  %1464 = vmatmul.msk.f32.gmra.mxu3 %vm384_vm0, %v2072_v60  ;;  %v2151_v31 = vld [vmem:[%s2792_s2 + $0x60] sm:$0xff]  ;;  %v291_v38 = vld [vmem:[%s1991_s0 + $0x18] sm:$0xff]  ;;  %v2168_v40 = vld [vmem:[%s2792_s2 + $0xb0] sm:$0xff] }
  0x41   : > { %630 = vmatpush.msrb.mxu1 %v334_v61  ;;  %1005 = vmatpush.msrb.mxu0 %v337_v62  ;;  %v260_v34 = vld [vmem:[%s1984_s11 + $0x10] sm:$0xff]  ;;  %v321_v39 = vadd.f32 %v291_v38, %v261_v36  ;;  %v2173_v41 = vld [vmem:[%s2792_s2 + $0xf8] sm:$0xff]  ;;  %v2183_v43 = vld [vmem:[%s2792_s2 + $0x68] sm:$0xff] }
  0x42   : > { %756 = vmatpush.msrb.mxu2 %v330_v0  ;;  %881 = vmatpush.msrb.mxu3 %v331_v1  ;;  %v290_v35 = vld [vmem:[%s1991_s0 + $0x10] sm:$0xff]  ;;  %v259_v44 = vld [vmem:[%s1984_s11 + $0x8] sm:$0xff]  ;;  %v262_v46 = vld [vmem:[%s1984_s11 + $0x20] sm:$0xff]  ;;  %s1791_s11 = sshra.s32 %s1316_s8, 4  ;;  %s1792_s11 = int_to_ptr.hbm [resolvable:$true] %s1791_s11 }
  0x43   : > { %1437 = vmatmul.msk.f32.gmra.mxu0 %vm384_vm0, %v2078_v2  ;;  %1446 = vmatmul.msk.f32.gmra.mxu1 %vm384_vm0, %v2083_v3  ;;  %v320_v37 = vadd.f32 %v290_v35, %v260_v34  ;;  %v2178_v42 = vld [vmem:[%s2792_s2 + $0x20] sm:$0xff]  ;;  %v289_v45 = vld [vmem:[%s1991_s0 + $0x8] sm:$0xff]  ;;  %v2217_v53 = vld [vmem:[%s2792_s2 + $0x70] sm:$0xff]  ;;  %p1798_p6 = scmp.lt.s32.totalorder %s1792_s11, %s2793_s3 }
  0x44   : > { %631 = vmatpush.msrb.mxu1 %v329_v7  ;;  %1006 = vmatpush.msrb.mxu0 %v332_v9  ;;  %v319_v47 = vadd.f32 %v289_v45, %v259_v44  ;;  %v292_v48 = vld [vmem:[%s1991_s0 + $0x20] sm:$0xff]  ;;  %v2200_v50 = vld [vmem:[%s2792_s2 + $0xb8] sm:$0xff]  ;;  %v353_v52 = vld [vmem:[%s2792_s2 + $0x28] sm:$0xff]  ;;  %s1793_s0 = scalar_lea.hbm %s1792_s11, 1440 }
  0x45   : > { %757 = vmatpush.msrb.mxu2 %v325_v17  ;;  %882 = vmatpush.msrb.mxu3 %v326_v19  ;;  %v322_v49 = vadd.f32 %v292_v48, %v262_v46  ;;  %v2205_v51 = vld [vmem:[%s2792_s2 + $0x100] sm:$0xff]  ;;  %v2230_v55 = vld [vmem:[%s2792_s2 + $0x108] sm:$0xff]  ;;  %v354_v56 = vld [vmem:[%s2792_s2 + $0x30] sm:$0xff]  ;;  %p1794_p3 = scmp.ne.s32.totalorder %s1792_s11, %s1793_s0  ;;  %p1799_p7 = scmp.lt.s32.totalorder %s1797_s10, %s1793_s0 }
  0x46   : > { %632 = vmatpush.msrb.mxu1 %v324_v24  ;;  %1007 = vmatpush.msrb.mxu0 %v327_v29  ;;  %v2225_v54 = vld [vmem:[%s2792_s2 + $0xc0] sm:$0xff]  ;;  %v2242_v57 = vld [vmem:[%s2792_s2 + $0x78] sm:$0xff]  ;;  %v2250_v58 = vld [vmem:[%s2792_s2 + $0xc8] sm:$0xff] }
  0x47   : > { %758 = vmatpush.msrb.mxu2 %v320_v37  ;;  %883 = vmatpush.msrb.mxu3 %v321_v39  ;;  %v2255_v61 = vld [vmem:[%s2792_s2 + $0x110] sm:$0xff]  ;;  %v355_v62 = vld [vmem:[%s2792_s2 + $0x38] sm:$0xff]  ;;  %v2267_v63 = vld [vmem:[%s2792_s2 + $0x80] sm:$0xff]  ;;  %p1795_p4 = pnand %p1794_p3, %p1942_p9  ;;  %p1800_p8 = por %p1799_p7, %p1798_p6 }
  0x48   : > { %1456 = vmatmul.msk.f32.gmra.mxu2 %vm384_vm0, %v2100_v10  ;;  %1465 = vmatmul.msk.f32.gmra.mxu3 %vm384_vm0, %v2105_v11  ;;  %v2275_v0 = vld [vmem:[%s2792_s2 + $0xd0] sm:$0xff]  ;;  %v2280_v1 = vld [vmem:[%s2792_s2 + $0x118] sm:$0xff]  ;;  %v356_v4 = vld [vmem:[%s2792_s2 + $0x40] sm:$0xff] }
  0x49   : > { %633 = vmatpush.msrb.mxu1 %v319_v47  ;;  %1008 = vmatpush.msrb.mxu0 %v322_v49  ;;  %v2292_v5 = vld [vmem:[%s2792_s2 + $0x88] sm:$0xff]  ;;  %p1796_p5 = pneg %p1795_p4 }
  0x4b   : > { %1438 = vmatmul.msk.f32.gmra.mxu0 %vm384_vm0, %v2110_v12  ;;  %1447 = vmatmul.msk.f32.gmra.mxu1 %vm384_vm0, %v2115_v13  ;;  %p1801_p10 = pnand %p1800_p8, %p1796_p5 }
  0x50   : > { %1457 = vmatmul.msk.f32.gmra.mxu2 %vm384_vm0, %v2136_v27  ;;  %1466 = vmatmul.msk.f32.gmra.mxu3 %vm384_vm0, %v2141_v28 }
  0x53   : > { %1439 = vmatmul.msk.f32.gmra.mxu0 %vm384_vm0, %v2146_v30  ;;  %1448 = vmatmul.msk.f32.gmra.mxu1 %vm384_vm0, %v2151_v31 }
  0x58   : > { %1458 = vmatmul.msk.f32.gmra.mxu2 %vm384_vm0, %v2168_v40  ;;  %1467 = vmatmul.msk.f32.gmra.mxu3 %vm384_vm0, %v2173_v41 }
  0x5b   : > { %1440 = vmatmul.msk.f32.gmra.mxu0 %vm384_vm0, %v2178_v42  ;;  %1449 = vmatmul.msk.f32.gmra.mxu1 %vm384_vm0, %v2183_v43 }
  0x60   : > { %1459 = vmatmul.msk.f32.gmra.mxu2 %vm384_vm0, %v2200_v50  ;;  %1468 = vmatmul.msk.f32.gmra.mxu3 %vm384_vm0, %v2205_v51 }
  0x63   : > { %1441 = vmatmul.msk.f32.gmra.mxu0 %vm384_vm0, %v353_v52  ;;  %1450 = vmatmul.msk.f32.gmra.mxu1 %vm384_vm0, %v2217_v53 }
  0x68   : > { %1460 = vmatmul.msk.f32.gmra.mxu2 %vm384_vm0, %v2225_v54  ;;  %1469 = vmatmul.msk.f32.gmra.mxu3 %vm384_vm0, %v2230_v55 }
  0x6b   : > { %1442 = vmatmul.msk.f32.gmra.mxu0 %vm384_vm0, %v354_v56  ;;  %1451 = vmatmul.msk.f32.gmra.mxu1 %vm384_vm0, %v2242_v57 }
  0x70   : > { %1461 = vmatmul.msk.f32.gmra.mxu2 %vm384_vm0, %v2250_v58  ;;  %1470 = vmatmul.msk.f32.gmra.mxu3 %vm384_vm0, %v2255_v61 }
  0x73   : > { %1443 = vmatmul.msk.f32.gmra.mxu0 %vm384_vm0, %v355_v62  ;;  %1452 = vmatmul.msk.f32.gmra.mxu1 %vm384_vm0, %v2267_v63 }
  0x78   : > { %1462 = vmatmul.msk.f32.gmra.mxu2 %vm384_vm0, %v2275_v0  ;;  %1471 = vmatmul.msk.f32.gmra.mxu3 %vm384_vm0, %v2280_v1 }
  0x7b   : > { %1444 = vmatmul.msk.f32.gmra.mxu0 %vm384_vm0, %v356_v4  ;;  %1453 = vmatmul.msk.f32.gmra.mxu1 %vm384_vm0, %v2292_v5 }
  0x80   : > { %1508 = vmatmul.msk.f32.vlgmr.msrb.gmra.mxu2 %vm384_vm0, %v2032_v32  ;;  %1544 = vmatmul.msk.f32.vlgmr.msrb.gmra.mxu3 %vm384_vm0, %v2032_v32 }
  0x83   : > { %1472 = vmatmul.msk.f32.vlgmr.msrb.gmra.mxu1 %vm384_vm0, %v2032_v32  ;;  %1580 = vmatmul.msk.f32.vlgmr.msrb.gmra.mxu0 %vm384_vm0, %v2032_v32 }
  0x88   : > { %1509 = vmatmul.msk.f32.gmra.mxu2 %vm384_vm0, %v2078_v2  ;;  %1545 = vmatmul.msk.f32.gmra.mxu3 %vm384_vm0, %v2078_v2 }
  0x8b   : > { %1473 = vmatmul.msk.f32.gmra.mxu1 %vm384_vm0, %v2078_v2  ;;  %1581 = vmatmul.msk.f32.gmra.mxu0 %vm384_vm0, %v2078_v2 }
  0x90   : > { %1510 = vmatmul.msk.f32.gmra.mxu2 %vm384_vm0, %v2110_v12  ;;  %1546 = vmatmul.msk.f32.gmra.mxu3 %vm384_vm0, %v2110_v12 }
  0x93   : > { %1474 = vmatmul.msk.f32.gmra.mxu1 %vm384_vm0, %v2110_v12  ;;  %1582 = vmatmul.msk.f32.gmra.mxu0 %vm384_vm0, %v2110_v12 }
  0x98   : > { %1511 = vmatmul.msk.f32.gmra.mxu2 %vm384_vm0, %v2146_v30  ;;  %1547 = vmatmul.msk.f32.gmra.mxu3 %vm384_vm0, %v2146_v30 }
  0x9b   : > { %1475 = vmatmul.msk.f32.gmra.mxu1 %vm384_vm0, %v2146_v30  ;;  %1583 = vmatmul.msk.f32.gmra.mxu0 %vm384_vm0, %v2146_v30 }
  0xa0   : > { %1512 = vmatmul.msk.f32.gmra.mxu2 %vm384_vm0, %v2178_v42  ;;  %1548 = vmatmul.msk.f32.gmra.mxu3 %vm384_vm0, %v2178_v42 }
  0xa3   : > { %1476 = vmatmul.msk.f32.gmra.mxu1 %vm384_vm0, %v2178_v42  ;;  %1584 = vmatmul.msk.f32.gmra.mxu0 %vm384_vm0, %v2178_v42 }
  0xa8   : > { %1513 = vmatmul.msk.f32.gmra.mxu2 %vm384_vm0, %v353_v52  ;;  %1549 = vmatmul.msk.f32.gmra.mxu3 %vm384_vm0, %v353_v52 }
  0xab   : > { %1477 = vmatmul.msk.f32.gmra.mxu1 %vm384_vm0, %v353_v52  ;;  %1585 = vmatmul.msk.f32.gmra.mxu0 %vm384_vm0, %v353_v52 }
  0xb0   : > { %1514 = vmatmul.msk.f32.gmra.mxu2 %vm384_vm0, %v354_v56  ;;  %1550 = vmatmul.msk.f32.gmra.mxu3 %vm384_vm0, %v354_v56 }
  0xb3   : > { %1478 = vmatmul.msk.f32.gmra.mxu1 %vm384_vm0, %v354_v56  ;;  %1586 = vmatmul.msk.f32.gmra.mxu0 %vm384_vm0, %v354_v56 }
  0xb8   : > { %1515 = vmatmul.msk.f32.gmra.mxu2 %vm384_vm0, %v355_v62  ;;  %1551 = vmatmul.msk.f32.gmra.mxu3 %vm384_vm0, %v355_v62  ;;  %v510_v32 = vpop.f32.mrf.mxu0  ;;  %v537_v2 = vpop.f32.mrf.mxu1 }
  0xb9   : > { %1118 = vst [vmem:[%s2348_s19] sm:$0xff] %v510_v32 }
  0xba   : > { %1163 = vst [vmem:[%s2348_s19 + $0x168] sm:$0xff] %v537_v2 }
  0xbb   : > { %v564_v6 = vpop.f32.mrf.mxu2  ;;  %v591_v7 = vpop.f32.mrf.mxu3  ;;  %1479 = vmatmul.msk.f32.gmra.mxu1 %vm384_vm0, %v355_v62  ;;  %1587 = vmatmul.msk.f32.gmra.mxu0 %vm384_vm0, %v355_v62 }
  0xbc   : > { %1208 = vst [vmem:[%s2348_s19 + $0x2d0] sm:$0xff] %v564_v6 }
  0xbd   : > { %1253 = vst [vmem:[%s2348_s19 + $0x438] sm:$0xff] %v591_v7 }
  0xc0   : > { %1516 = vmatmul.msk.f32.gmra.mxu2 %vm384_vm0, %v356_v4  ;;  %1552 = vmatmul.msk.f32.gmra.mxu3 %vm384_vm0, %v356_v4  ;;  %v513_v8 = vpop.f32.mrf.mxu0  ;;  %v540_v9 = vpop.f32.mrf.mxu1 }
  0xc1   : > { %1123 = vst [vmem:[%s2348_s19 + $0x28] sm:$0xff] %v513_v8 }
  0xc2   : > { %1168 = vst [vmem:[%s2348_s19 + $0x190] sm:$0xff] %v540_v9 }
  0xc3   : > { %v567_v12 = vpop.f32.mrf.mxu2  ;;  %v594_v14 = vpop.f32.mrf.mxu3  ;;  %1480 = vmatmul.msk.f32.gmra.mxu1 %vm384_vm0, %v356_v4  ;;  %1588 = vmatmul.msk.f32.gmra.mxu0 %vm384_vm0, %v356_v4 }
  0xc4   : > { %1213 = vst [vmem:[%s2348_s19 + $0x2f8] sm:$0xff] %v567_v12 }
  0xc5   : > { %1258 = vst [vmem:[%s2348_s19 + $0x460] sm:$0xff] %v594_v14 }
  0xc8   : > { %1517 = vmatmul.msk.f32.gmra.mxu2 %vm384_vm0, %v2037_v33  ;;  %1553 = vmatmul.msk.f32.gmra.mxu3 %vm384_vm0, %v2037_v33  ;;  %v516_v15 = vpop.f32.mrf.mxu0  ;;  %v543_v16 = vpop.f32.mrf.mxu1 }
  0xc9   : > { %1128 = vst [vmem:[%s2348_s19 + $0x50] sm:$0xff] %v516_v15 }
  0xca   : > { %1173 = vst [vmem:[%s2348_s19 + $0x1b8] sm:$0xff] %v543_v16 }
  0xcb   : > { %v570_v17 = vpop.f32.mrf.mxu2  ;;  %v597_v18 = vpop.f32.mrf.mxu3  ;;  %1481 = vmatmul.msk.f32.gmra.mxu1 %vm384_vm0, %v2037_v33  ;;  %1589 = vmatmul.msk.f32.gmra.mxu0 %vm384_vm0, %v2037_v33 }
  0xcc   : > { %1218 = vst [vmem:[%s2348_s19 + $0x320] sm:$0xff] %v570_v17 }
  0xcd   : > { %1263 = vst [vmem:[%s2348_s19 + $0x488] sm:$0xff] %v597_v18 }
  0xd0   : > { %1518 = vmatmul.msk.f32.gmra.mxu2 %vm384_vm0, %v2083_v3  ;;  %1554 = vmatmul.msk.f32.gmra.mxu3 %vm384_vm0, %v2083_v3  ;;  %v519_v19 = vpop.f32.mrf.mxu0  ;;  %v546_v20 = vpop.f32.mrf.mxu1 }
  0xd1   : > { %1133 = vst [vmem:[%s2348_s19 + $0x78] sm:$0xff] %v519_v19 }
  0xd2   : > { %1178 = vst [vmem:[%s2348_s19 + $0x1e0] sm:$0xff] %v546_v20 }
  0xd3   : > { %v573_v21 = vpop.f32.mrf.mxu2  ;;  %v600_v24 = vpop.f32.mrf.mxu3  ;;  %1482 = vmatmul.msk.f32.gmra.mxu1 %vm384_vm0, %v2083_v3  ;;  %1590 = vmatmul.msk.f32.gmra.mxu0 %vm384_vm0, %v2083_v3 }
  0xd4   : > { %1223 = vst [vmem:[%s2348_s19 + $0x348] sm:$0xff] %v573_v21 }
  0xd5   : > { %1268 = vst [vmem:[%s2348_s19 + $0x4b0] sm:$0xff] %v600_v24 }
  0xd8   : > { %1519 = vmatmul.msk.f32.gmra.mxu2 %vm384_vm0, %v2115_v13  ;;  %1555 = vmatmul.msk.f32.gmra.mxu3 %vm384_vm0, %v2115_v13  ;;  %v522_v33 = vpop.f32.mrf.mxu0  ;;  %v549_v25 = vpop.f32.mrf.mxu1 }
  0xd9   : > { %1138 = vst [vmem:[%s2348_s19 + $0xa0] sm:$0xff] %v522_v33 }
  0xda   : > { %1183 = vst [vmem:[%s2348_s19 + $0x208] sm:$0xff] %v549_v25 }
  0xdb   : > { %v576_v26 = vpop.f32.mrf.mxu2  ;;  %v603_v29 = vpop.f32.mrf.mxu3  ;;  %1483 = vmatmul.msk.f32.gmra.mxu1 %vm384_vm0, %v2115_v13  ;;  %1591 = vmatmul.msk.f32.gmra.mxu0 %vm384_vm0, %v2115_v13 }
  0xdc   : > { %1228 = vst [vmem:[%s2348_s19 + $0x370] sm:$0xff] %v576_v26 }
  0xdd   : > { %1273 = vst [vmem:[%s2348_s19 + $0x4d8] sm:$0xff] %v603_v29 }
  0xe0   : > { %1520 = vmatmul.msk.f32.gmra.mxu2 %vm384_vm0, %v2151_v31  ;;  %1556 = vmatmul.msk.f32.gmra.mxu3 %vm384_vm0, %v2151_v31  ;;  %v525_v3 = vpop.f32.mrf.mxu0  ;;  %v552_v30 = vpop.f32.mrf.mxu1 }
  0xe1   : > { %1143 = vst [vmem:[%s2348_s19 + $0xc8] sm:$0xff] %v525_v3 }
  0xe2   : > { %1188 = vst [vmem:[%s2348_s19 + $0x230] sm:$0xff] %v552_v30 }
  0xe3   : > { %v579_v34 = vpop.f32.mrf.mxu2  ;;  %v606_v35 = vpop.f32.mrf.mxu3  ;;  %1484 = vmatmul.msk.f32.gmra.mxu1 %vm384_vm0, %v2151_v31  ;;  %1592 = vmatmul.msk.f32.gmra.mxu0 %vm384_vm0, %v2151_v31 }
  0xe4   : > { %1233 = vst [vmem:[%s2348_s19 + $0x398] sm:$0xff] %v579_v34 }
  0xe5   : > { %1278 = vst [vmem:[%s2348_s19 + $0x500] sm:$0xff] %v606_v35 }
  0xe8   : > { %1521 = vmatmul.msk.f32.gmra.mxu2 %vm384_vm0, %v2183_v43  ;;  %1557 = vmatmul.msk.f32.gmra.mxu3 %vm384_vm0, %v2183_v43  ;;  %v528_v13 = vpop.f32.mrf.mxu0  ;;  %v555_v36 = vpop.f32.mrf.mxu1 }
  0xe9   : > { %1148 = vst [vmem:[%s2348_s19 + $0xf0] sm:$0xff] %v528_v13 }
  0xea   : > { %1193 = vst [vmem:[%s2348_s19 + $0x258] sm:$0xff] %v555_v36 }
  0xeb   : > { %v582_v37 = vpop.f32.mrf.mxu2  ;;  %v609_v38 = vpop.f32.mrf.mxu3  ;;  %1485 = vmatmul.msk.f32.gmra.mxu1 %vm384_vm0, %v2183_v43  ;;  %1593 = vmatmul.msk.f32.gmra.mxu0 %vm384_vm0, %v2183_v43 }
  0xec   : > { %1238 = vst [vmem:[%s2348_s19 + $0x3c0] sm:$0xff] %v582_v37 }
  0xed   : > { %1283 = vst [vmem:[%s2348_s19 + $0x528] sm:$0xff] %v609_v38 }
  0xf0   : > { %1522 = vmatmul.msk.f32.gmra.mxu2 %vm384_vm0, %v2217_v53  ;;  %1558 = vmatmul.msk.f32.gmra.mxu3 %vm384_vm0, %v2217_v53  ;;  %v531_v31 = vpop.f32.mrf.mxu0  ;;  %v558_v39 = vpop.f32.mrf.mxu1 }
  0xf1   : > { %1153 = vst [vmem:[%s2348_s19 + $0x118] sm:$0xff] %v531_v31 }
  0xf2   : > { %1198 = vst [vmem:[%s2348_s19 + $0x280] sm:$0xff] %v558_v39 }
  0xf3   : > { %v585_v42 = vpop.f32.mrf.mxu2  ;;  %v612_v44 = vpop.f32.mrf.mxu3  ;;  %1486 = vmatmul.msk.f32.gmra.mxu1 %vm384_vm0, %v2217_v53  ;;  %1594 = vmatmul.msk.f32.gmra.mxu0 %vm384_vm0, %v2217_v53 }
  0xf4   : > { %1243 = vst [vmem:[%s2348_s19 + $0x3e8] sm:$0xff] %v585_v42 }
  0xf5   : > { %1288 = vst [vmem:[%s2348_s19 + $0x550] sm:$0xff] %v612_v44 }
  0xf8   : > { %1523 = vmatmul.msk.f32.gmra.mxu2 %vm384_vm0, %v2242_v57  ;;  %1559 = vmatmul.msk.f32.gmra.mxu3 %vm384_vm0, %v2242_v57  ;;  %v534_v43 = vpop.f32.mrf.mxu0  ;;  %v561_v45 = vpop.f32.mrf.mxu1 }
  0xf9   : > { %1158 = vst [vmem:[%s2348_s19 + $0x140] sm:$0xff] %v534_v43 }
  0xfa   : > { %1203 = vst [vmem:[%s2348_s19 + $0x2a8] sm:$0xff] %v561_v45 }
  0xfb   : > { %v588_v46 = vpop.f32.mrf.mxu2  ;;  %v615_v47 = vpop.f32.mrf.mxu3  ;;  %1487 = vmatmul.msk.f32.gmra.mxu1 %vm384_vm0, %v2242_v57  ;;  %1595 = vmatmul.msk.f32.gmra.mxu0 %vm384_vm0, %v2242_v57 }
  0xfc   : > { %1248 = vst [vmem:[%s2348_s19 + $0x410] sm:$0xff] %v588_v46 }
  0xfd   : > { %1293 = vst [vmem:[%s2348_s19 + $0x578] sm:$0xff] %v615_v47 }
 0x100   : > { %1524 = vmatmul.msk.f32.gmra.mxu2 %vm384_vm0, %v2267_v63  ;;  %1560 = vmatmul.msk.f32.gmra.mxu3 %vm384_vm0, %v2267_v63  ;;  %v635_v48 = vpop.f32.mrf.mxu1  ;;  %v1010_v49 = vpop.f32.mrf.mxu0 }
 0x101   : > { %1119 = vst [vmem:[%s2348_s19 + $0x8] sm:$0xff] %v635_v48 }
 0x102   : > { %1122 = vst [vmem:[%s2348_s19 + $0x20] sm:$0xff] %v1010_v49 }
 0x103   : > { %v760_v52 = vpop.f32.mrf.mxu2  ;;  %v885_v53 = vpop.f32.mrf.mxu3  ;;  %1488 = vmatmul.msk.f32.gmra.mxu1 %vm384_vm0, %v2267_v63  ;;  %1596 = vmatmul.msk.f32.gmra.mxu0 %vm384_vm0, %v2267_v63 }
 0x104   : > { %1120 = vst [vmem:[%s2348_s19 + $0x10] sm:$0xff] %v760_v52 }
 0x105   : > { %1121 = vst [vmem:[%s2348_s19 + $0x18] sm:$0xff] %v885_v53 }
 0x108   : > { %1525 = vmatmul.msk.f32.gmra.mxu2 %vm384_vm0, %v2292_v5  ;;  %1561 = vmatmul.msk.f32.gmra.mxu3 %vm384_vm0, %v2292_v5  ;;  %v638_v56 = vpop.f32.mrf.mxu1  ;;  %v1013_v57 = vpop.f32.mrf.mxu0 }
 0x109   : > { %1124 = vst [vmem:[%s2348_s19 + $0x30] sm:$0xff] %v638_v56 }
 0x10a   : > { %1127 = vst [vmem:[%s2348_s19 + $0x48] sm:$0xff] %v1013_v57 }
 0x10b   : > { %v763_v62 = vpop.f32.mrf.mxu2  ;;  %v888_v4 = vpop.f32.mrf.mxu3  ;;  %1489 = vmatmul.msk.f32.gmra.mxu1 %vm384_vm0, %v2292_v5  ;;  %1597 = vmatmul.msk.f32.gmra.mxu0 %vm384_vm0, %v2292_v5 }
 0x10c   : > { %1125 = vst [vmem:[%s2348_s19 + $0x38] sm:$0xff] %v763_v62 }
 0x10d   : > { %1126 = vst [vmem:[%s2348_s19 + $0x40] sm:$0xff] %v888_v4 }
 0x110   : > { %1526 = vmatmul.msk.f32.gmra.mxu2 %vm384_vm0, %v2016_v22  ;;  %1562 = vmatmul.msk.f32.gmra.mxu3 %vm384_vm0, %v2016_v22  ;;  %v641_v63 = vpop.f32.mrf.mxu1  ;;  %v1016_v32 = vpop.f32.mrf.mxu0 }
 0x111   : > { %1129 = vst [vmem:[%s2348_s19 + $0x58] sm:$0xff] %v641_v63 }
 0x112   : > { %1132 = vst [vmem:[%s2348_s19 + $0x70] sm:$0xff] %v1016_v32 }
 0x113   : > { %v766_v2 = vpop.f32.mrf.mxu2  ;;  %v891_v6 = vpop.f32.mrf.mxu3  ;;  %1490 = vmatmul.msk.f32.gmra.mxu1 %vm384_vm0, %v2016_v22  ;;  %1598 = vmatmul.msk.f32.gmra.mxu0 %vm384_vm0, %v2016_v22 }
 0x114   : > { %1130 = vst [vmem:[%s2348_s19 + $0x60] sm:$0xff] %v766_v2 }
 0x115   : > { %1131 = vst [vmem:[%s2348_s19 + $0x68] sm:$0xff] %v891_v6 }
 0x118   : > { %1527 = vmatmul.msk.f32.gmra.mxu2 %vm384_vm0, %v2067_v59  ;;  %1563 = vmatmul.msk.f32.gmra.mxu3 %vm384_vm0, %v2067_v59  ;;  %v644_v5 = vpop.f32.mrf.mxu1  ;;  %v1019_v7 = vpop.f32.mrf.mxu0 }
 0x119   : > { %1134 = vst [vmem:[%s2348_s19 + $0x80] sm:$0xff] %v644_v5 }
 0x11a   : > { %1137 = vst [vmem:[%s2348_s19 + $0x98] sm:$0xff] %v1019_v7 }
 0x11b   : > { %v769_v8 = vpop.f32.mrf.mxu2  ;;  %v894_v9 = vpop.f32.mrf.mxu3  ;;  %1491 = vmatmul.msk.f32.gmra.mxu1 %vm384_vm0, %v2067_v59  ;;  %1599 = vmatmul.msk.f32.gmra.mxu0 %vm384_vm0, %v2067_v59 }
 0x11c   : > { %1135 = vst [vmem:[%s2348_s19 + $0x88] sm:$0xff] %v769_v8 }
 0x11d   : > { %1136 = vst [vmem:[%s2348_s19 + $0x90] sm:$0xff] %v894_v9 }
 0x120   : > { %1528 = vmatmul.msk.f32.gmra.mxu2 %vm384_vm0, %v2100_v10  ;;  %1564 = vmatmul.msk.f32.gmra.mxu3 %vm384_vm0, %v2100_v10  ;;  %v647_v22 = vpop.f32.mrf.mxu1  ;;  %v1022_v12 = vpop.f32.mrf.mxu0 }
 0x121   : > { %1139 = vst [vmem:[%s2348_s19 + $0xa8] sm:$0xff] %v647_v22 }
 0x122   : > { %1142 = vst [vmem:[%s2348_s19 + $0xc0] sm:$0xff] %v1022_v12 }
 0x123   : > { %v772_v14 = vpop.f32.mrf.mxu2  ;;  %v897_v15 = vpop.f32.mrf.mxu3  ;;  %1492 = vmatmul.msk.f32.gmra.mxu1 %vm384_vm0, %v2100_v10  ;;  %1600 = vmatmul.msk.f32.gmra.mxu0 %vm384_vm0, %v2100_v10 }
 0x124   : > { %1140 = vst [vmem:[%s2348_s19 + $0xb0] sm:$0xff] %v772_v14 }
 0x125   : > { %1141 = vst [vmem:[%s2348_s19 + $0xb8] sm:$0xff] %v897_v15 }
 0x128   : > { %1529 = vmatmul.msk.f32.gmra.mxu2 %vm384_vm0, %v2136_v27  ;;  %1565 = vmatmul.msk.f32.gmra.mxu3 %vm384_vm0, %v2136_v27  ;;  %v650_v59 = vpop.f32.mrf.mxu1  ;;  %v1025_v16 = vpop.f32.mrf.mxu0 }
 0x129   : > { %1144 = vst [vmem:[%s2348_s19 + $0xd0] sm:$0xff] %v650_v59 }
 0x12a   : > { %1147 = vst [vmem:[%s2348_s19 + $0xe8] sm:$0xff] %v1025_v16 }
 0x12b   : > { %v775_v17 = vpop.f32.mrf.mxu2  ;;  %v900_v18 = vpop.f32.mrf.mxu3  ;;  %1493 = vmatmul.msk.f32.gmra.mxu1 %vm384_vm0, %v2136_v27  ;;  %1601 = vmatmul.msk.f32.gmra.mxu0 %vm384_vm0, %v2136_v27 }
 0x12c   : > { %1145 = vst [vmem:[%s2348_s19 + $0xd8] sm:$0xff] %v775_v17 }
 0x12d   : > { %1146 = vst [vmem:[%s2348_s19 + $0xe0] sm:$0xff] %v900_v18 }
 0x130   : > { %1530 = vmatmul.msk.f32.gmra.mxu2 %vm384_vm0, %v2168_v40  ;;  %1566 = vmatmul.msk.f32.gmra.mxu3 %vm384_vm0, %v2168_v40  ;;  %v653_v10 = vpop.f32.mrf.mxu1  ;;  %v1028_v19 = vpop.f32.mrf.mxu0 }
 0x131   : > { %1149 = vst [vmem:[%s2348_s19 + $0xf8] sm:$0xff] %v653_v10 }
 0x132   : > { %1152 = vst [vmem:[%s2348_s19 + $0x110] sm:$0xff] %v1028_v19 }
 0x133   : > { %v778_v20 = vpop.f32.mrf.mxu2  ;;  %v903_v21 = vpop.f32.mrf.mxu3  ;;  %1494 = vmatmul.msk.f32.gmra.mxu1 %vm384_vm0, %v2168_v40  ;;  %1602 = vmatmul.msk.f32.gmra.mxu0 %vm384_vm0, %v2168_v40 }
 0x134   : > { %1150 = vst [vmem:[%s2348_s19 + $0x100] sm:$0xff] %v778_v20 }
 0x135   : > { %1151 = vst [vmem:[%s2348_s19 + $0x108] sm:$0xff] %v903_v21 }
 0x138   : > { %1531 = vmatmul.msk.f32.gmra.mxu2 %vm384_vm0, %v2200_v50  ;;  %1567 = vmatmul.msk.f32.gmra.mxu3 %vm384_vm0, %v2200_v50  ;;  %v656_v27 = vpop.f32.mrf.mxu1  ;;  %v1031_v24 = vpop.f32.mrf.mxu0 }
 0x139   : > { %1154 = vst [vmem:[%s2348_s19 + $0x120] sm:$0xff] %v656_v27 }
 0x13a   : > { %1157 = vst [vmem:[%s2348_s19 + $0x138] sm:$0xff] %v1031_v24 }
 0x13b   : > { %v781_v33 = vpop.f32.mrf.mxu2  ;;  %v906_v25 = vpop.f32.mrf.mxu3  ;;  %1495 = vmatmul.msk.f32.gmra.mxu1 %vm384_vm0, %v2200_v50  ;;  %1603 = vmatmul.msk.f32.gmra.mxu0 %vm384_vm0, %v2200_v50 }
 0x13c   : > { %1155 = vst [vmem:[%s2348_s19 + $0x128] sm:$0xff] %v781_v33 }
 0x13d   : > { %1156 = vst [vmem:[%s2348_s19 + $0x130] sm:$0xff] %v906_v25 }
 0x140   : > { %1532 = vmatmul.msk.f32.gmra.mxu2 %vm384_vm0, %v2225_v54  ;;  %1568 = vmatmul.msk.f32.gmra.mxu3 %vm384_vm0, %v2225_v54  ;;  %v659_v40 = vpop.f32.mrf.mxu1  ;;  %v1034_v26 = vpop.f32.mrf.mxu0 }
 0x141   : > { %1159 = vst [vmem:[%s2348_s19 + $0x148] sm:$0xff] %v659_v40 }
 0x142   : > { %1162 = vst [vmem:[%s2348_s19 + $0x160] sm:$0xff] %v1034_v26 }
 0x143   : > { %v784_v29 = vpop.f32.mrf.mxu2  ;;  %v909_v3 = vpop.f32.mrf.mxu3  ;;  %1496 = vmatmul.msk.f32.gmra.mxu1 %vm384_vm0, %v2225_v54  ;;  %1604 = vmatmul.msk.f32.gmra.mxu0 %vm384_vm0, %v2225_v54 }
 0x144   : > { %1160 = vst [vmem:[%s2348_s19 + $0x150] sm:$0xff] %v784_v29 }
 0x145   : > { %1161 = vst [vmem:[%s2348_s19 + $0x158] sm:$0xff] %v909_v3 }
 0x148   : > { %1533 = vmatmul.msk.f32.gmra.mxu2 %vm384_vm0, %v2250_v58  ;;  %1569 = vmatmul.msk.f32.gmra.mxu3 %vm384_vm0, %v2250_v58  ;;  %v662_v50 = vpop.f32.mrf.mxu1  ;;  %v1037_v30 = vpop.f32.mrf.mxu0 }
 0x149   : > { %1164 = vst [vmem:[%s2348_s19 + $0x170] sm:$0xff] %v662_v50 }
 0x14a   : > { %1167 = vst [vmem:[%s2348_s19 + $0x188] sm:$0xff] %v1037_v30 }
 0x14b   : > { %v787_v34 = vpop.f32.mrf.mxu2  ;;  %v912_v35 = vpop.f32.mrf.mxu3  ;;  %1497 = vmatmul.msk.f32.gmra.mxu1 %vm384_vm0, %v2250_v58  ;;  %1605 = vmatmul.msk.f32.gmra.mxu0 %vm384_vm0, %v2250_v58 }
 0x14c   : > { %1165 = vst [vmem:[%s2348_s19 + $0x178] sm:$0xff] %v787_v34 }
 0x14d   : > { %1166 = vst [vmem:[%s2348_s19 + $0x180] sm:$0xff] %v912_v35 }
 0x150   : > { %1534 = vmatmul.msk.f32.gmra.mxu2 %vm384_vm0, %v2275_v0  ;;  %1570 = vmatmul.msk.f32.gmra.mxu3 %vm384_vm0, %v2275_v0  ;;  %v665_v54 = vpop.f32.mrf.mxu1  ;;  %v1040_v13 = vpop.f32.mrf.mxu0 }
 0x151   : > { %1169 = vst [vmem:[%s2348_s19 + $0x198] sm:$0xff] %v665_v54 }
 0x152   : > { %1172 = vst [vmem:[%s2348_s19 + $0x1b0] sm:$0xff] %v1040_v13 }
 0x153   : > { %v790_v36 = vpop.f32.mrf.mxu2  ;;  %v915_v37 = vpop.f32.mrf.mxu3  ;;  %1498 = vmatmul.msk.f32.gmra.mxu1 %vm384_vm0, %v2275_v0  ;;  %1606 = vmatmul.msk.f32.gmra.mxu0 %vm384_vm0, %v2275_v0 }
 0x154   : > { %1170 = vst [vmem:[%s2348_s19 + $0x1a0] sm:$0xff] %v790_v36 }
 0x155   : > { %1171 = vst [vmem:[%s2348_s19 + $0x1a8] sm:$0xff] %v915_v37 }
 0x158   : > { %1535 = vmatmul.msk.f32.gmra.mxu2 %vm384_vm0, %v2021_v23  ;;  %1571 = vmatmul.msk.f32.gmra.mxu3 %vm384_vm0, %v2021_v23  ;;  %v668_v58 = vpop.f32.mrf.mxu1  ;;  %v1043_v38 = vpop.f32.mrf.mxu0 }
 0x159   : > { %1174 = vst [vmem:[%s2348_s19 + $0x1c0] sm:$0xff] %v668_v58 }
 0x15a   : > { %1177 = vst [vmem:[%s2348_s19 + $0x1d8] sm:$0xff] %v1043_v38 }
 0x15b   : > { %v793_v31 = vpop.f32.mrf.mxu2  ;;  %v918_v39 = vpop.f32.mrf.mxu3  ;;  %1499 = vmatmul.msk.f32.gmra.mxu1 %vm384_vm0, %v2021_v23  ;;  %1607 = vmatmul.msk.f32.gmra.mxu0 %vm384_vm0, %v2021_v23 }
 0x15c   : > { %1175 = vst [vmem:[%s2348_s19 + $0x1c8] sm:$0xff] %v793_v31 }
 0x15d   : > { %1176 = vst [vmem:[%s2348_s19 + $0x1d0] sm:$0xff] %v918_v39 }
 0x160   : > { %1536 = vmatmul.msk.f32.gmra.mxu2 %vm384_vm0, %v2072_v60  ;;  %1572 = vmatmul.msk.f32.gmra.mxu3 %vm384_vm0, %v2072_v60  ;;  %v671_v0 = vpop.f32.mrf.mxu1  ;;  %v1046_v42 = vpop.f32.mrf.mxu0 }
 0x161   : > { %1179 = vst [vmem:[%s2348_s19 + $0x1e8] sm:$0xff] %v671_v0 }
 0x162   : > { %1182 = vst [vmem:[%s2348_s19 + $0x200] sm:$0xff] %v1046_v42 }
 0x163   : > { %v796_v44 = vpop.f32.mrf.mxu2  ;;  %v921_v43 = vpop.f32.mrf.mxu3  ;;  %1500 = vmatmul.msk.f32.gmra.mxu1 %vm384_vm0, %v2072_v60  ;;  %1608 = vmatmul.msk.f32.gmra.mxu0 %vm384_vm0, %v2072_v60 }
 0x164   : > { %1180 = vst [vmem:[%s2348_s19 + $0x1f0] sm:$0xff] %v796_v44 }
 0x165   : > { %1181 = vst [vmem:[%s2348_s19 + $0x1f8] sm:$0xff] %v921_v43 }
 0x168   : > { %1537 = vmatmul.msk.f32.gmra.mxu2 %vm384_vm0, %v2105_v11  ;;  %1573 = vmatmul.msk.f32.gmra.mxu3 %vm384_vm0, %v2105_v11  ;;  %v674_v23 = vpop.f32.mrf.mxu1  ;;  %v1049_v45 = vpop.f32.mrf.mxu0 }
 0x169   : > { %1184 = vst [vmem:[%s2348_s19 + $0x210] sm:$0xff] %v674_v23 }
 0x16a   : > { %1187 = vst [vmem:[%s2348_s19 + $0x228] sm:$0xff] %v1049_v45 }
 0x16b   : > { %v799_v46 = vpop.f32.mrf.mxu2  ;;  %v924_v47 = vpop.f32.mrf.mxu3  ;;  %1501 = vmatmul.msk.f32.gmra.mxu1 %vm384_vm0, %v2105_v11  ;;  %1609 = vmatmul.msk.f32.gmra.mxu0 %vm384_vm0, %v2105_v11 }
 0x16c   : > { %1185 = vst [vmem:[%s2348_s19 + $0x218] sm:$0xff] %v799_v46 }
 0x16d   : > { %1186 = vst [vmem:[%s2348_s19 + $0x220] sm:$0xff] %v924_v47 }
 0x170   : > { %1538 = vmatmul.msk.f32.gmra.mxu2 %vm384_vm0, %v2141_v28  ;;  %1574 = vmatmul.msk.f32.gmra.mxu3 %vm384_vm0, %v2141_v28  ;;  %v677_v60 = vpop.f32.mrf.mxu1  ;;  %v1052_v48 = vpop.f32.mrf.mxu0 }
 0x171   : > { %1189 = vst [vmem:[%s2348_s19 + $0x238] sm:$0xff] %v677_v60 }
 0x172   : > { %1192 = vst [vmem:[%s2348_s19 + $0x250] sm:$0xff] %v1052_v48 }
 0x173   : > { %v802_v49 = vpop.f32.mrf.mxu2  ;;  %v927_v52 = vpop.f32.mrf.mxu3  ;;  %1502 = vmatmul.msk.f32.gmra.mxu1 %vm384_vm0, %v2141_v28  ;;  %1610 = vmatmul.msk.f32.gmra.mxu0 %vm384_vm0, %v2141_v28 }
 0x174   : > { %1190 = vst [vmem:[%s2348_s19 + $0x240] sm:$0xff] %v802_v49 }
 0x175   : > { %1191 = vst [vmem:[%s2348_s19 + $0x248] sm:$0xff] %v927_v52 }
 0x178   : > { %1539 = vmatmul.msk.f32.gmra.mxu2 %vm384_vm0, %v2173_v41  ;;  %1575 = vmatmul.msk.f32.gmra.mxu3 %vm384_vm0, %v2173_v41  ;;  %v680_v11 = vpop.f32.mrf.mxu1  ;;  %v1055_v53 = vpop.f32.mrf.mxu0 }
 0x179   : > { %1194 = vst [vmem:[%s2348_s19 + $0x260] sm:$0xff] %v680_v11 }
 0x17a   : > { %1197 = vst [vmem:[%s2348_s19 + $0x278] sm:$0xff] %v1055_v53 }
 0x17b   : > { %v805_v56 = vpop.f32.mrf.mxu2  ;;  %v930_v57 = vpop.f32.mrf.mxu3  ;;  %1503 = vmatmul.msk.f32.gmra.mxu1 %vm384_vm0, %v2173_v41  ;;  %1611 = vmatmul.msk.f32.gmra.mxu0 %vm384_vm0, %v2173_v41 }
 0x17c   : > { %1195 = vst [vmem:[%s2348_s19 + $0x268] sm:$0xff] %v805_v56 }
 0x17d   : > { %1196 = vst [vmem:[%s2348_s19 + $0x270] sm:$0xff] %v930_v57 }
 0x180   : > { %1540 = vmatmul.msk.f32.gmra.mxu2 %vm384_vm0, %v2205_v51  ;;  %1576 = vmatmul.msk.f32.gmra.mxu3 %vm384_vm0, %v2205_v51  ;;  %v683_v28 = vpop.f32.mrf.mxu1  ;;  %v1058_v62 = vpop.f32.mrf.mxu0 }
 0x181   : > { %1199 = vst [vmem:[%s2348_s19 + $0x288] sm:$0xff] %v683_v28 }
 0x182   : > { %1202 = vst [vmem:[%s2348_s19 + $0x2a0] sm:$0xff] %v1058_v62 }
 0x183   : > { %v808_v4 = vpop.f32.mrf.mxu2  ;;  %v933_v63 = vpop.f32.mrf.mxu3  ;;  %1504 = vmatmul.msk.f32.gmra.mxu1 %vm384_vm0, %v2205_v51  ;;  %1612 = vmatmul.msk.f32.gmra.mxu0 %vm384_vm0, %v2205_v51 }
 0x184   : > { %1200 = vst [vmem:[%s2348_s19 + $0x290] sm:$0xff] %v808_v4 }
 0x185   : > { %1201 = vst [vmem:[%s2348_s19 + $0x298] sm:$0xff] %v933_v63 }
 0x188   : > { %1541 = vmatmul.msk.f32.gmra.mxu2 %vm384_vm0, %v2230_v55  ;;  %1577 = vmatmul.msk.f32.gmra.mxu3 %vm384_vm0, %v2230_v55  ;;  %v686_v41 = vpop.f32.mrf.mxu1  ;;  %v1061_v32 = vpop.f32.mrf.mxu0 }
 0x189   : > { %1204 = vst [vmem:[%s2348_s19 + $0x2b0] sm:$0xff] %v686_v41 }
 0x18a   : > { %1207 = vst [vmem:[%s2348_s19 + $0x2c8] sm:$0xff] %v1061_v32 }
 0x18b   : > { %v811_v2 = vpop.f32.mrf.mxu2  ;;  %v936_v6 = vpop.f32.mrf.mxu3  ;;  %1505 = vmatmul.msk.f32.gmra.mxu1 %vm384_vm0, %v2230_v55  ;;  %1613 = vmatmul.msk.f32.gmra.mxu0 %vm384_vm0, %v2230_v55 }
 0x18c   : > { %1205 = vst [vmem:[%s2348_s19 + $0x2b8] sm:$0xff] %v811_v2 }
 0x18d   : > { %1206 = vst [vmem:[%s2348_s19 + $0x2c0] sm:$0xff] %v936_v6 }
 0x190   : > { %1542 = vmatmul.msk.f32.gmra.mxu2 %vm384_vm0, %v2255_v61  ;;  %1578 = vmatmul.msk.f32.gmra.mxu3 %vm384_vm0, %v2255_v61  ;;  %v689_v51 = vpop.f32.mrf.mxu1  ;;  %v1064_v5 = vpop.f32.mrf.mxu0 }
 0x191   : > { %1209 = vst [vmem:[%s2348_s19 + $0x2d8] sm:$0xff] %v689_v51 }
 0x192   : > { %1212 = vst [vmem:[%s2348_s19 + $0x2f0] sm:$0xff] %v1064_v5 }
 0x193   : > { %v814_v7 = vpop.f32.mrf.mxu2  ;;  %v939_v8 = vpop.f32.mrf.mxu3  ;;  %1506 = vmatmul.msk.f32.gmra.mxu1 %vm384_vm0, %v2255_v61  ;;  %1614 = vmatmul.msk.f32.gmra.mxu0 %vm384_vm0, %v2255_v61 }
 0x194   : > { %1210 = vst [vmem:[%s2348_s19 + $0x2e0] sm:$0xff] %v814_v7 }
 0x195   : > { %1211 = vst [vmem:[%s2348_s19 + $0x2e8] sm:$0xff] %v939_v8 }
 0x198   : > { %1543 = vmatmul.msk.f32.gmra.mxu2 %vm384_vm0, %v2280_v1  ;;  %1579 = vmatmul.msk.f32.gmra.mxu3 %vm384_vm0, %v2280_v1  ;;  %v692_v55 = vpop.f32.mrf.mxu1  ;;  %v1067_v9 = vpop.f32.mrf.mxu0 }
 0x199   : > { %1214 = vst [vmem:[%s2348_s19 + $0x300] sm:$0xff] %v692_v55 }
 0x19a   : > { %1217 = vst [vmem:[%s2348_s19 + $0x318] sm:$0xff] %v1067_v9 }
 0x19b   : > { %v817_v22 = vpop.f32.mrf.mxu2  ;;  %v942_v12 = vpop.f32.mrf.mxu3  ;;  %1507 = vmatmul.msk.f32.gmra.mxu1 %vm384_vm0, %v2280_v1  ;;  %1615 = vmatmul.msk.f32.gmra.mxu0 %vm384_vm0, %v2280_v1 }
 0x19c   : > { %1215 = vst [vmem:[%s2348_s19 + $0x308] sm:$0xff] %v817_v22 }
 0x19d   : > { %1216 = vst [vmem:[%s2348_s19 + $0x310] sm:$0xff] %v942_v12 }
 0x1a0   : > { %v695_v61 = vpop.f32.mrf.mxu1  ;;  %v1070_v14 = vpop.f32.mrf.mxu0 }
 0x1a1   : > { %1219 = vst [vmem:[%s2348_s19 + $0x328] sm:$0xff] %v695_v61 }
 0x1a2   : > { %1222 = vst [vmem:[%s2348_s19 + $0x340] sm:$0xff] %v1070_v14 }
 0x1a3   : > { %v820_v15 = vpop.f32.mrf.mxu2  ;;  %v945_v59 = vpop.f32.mrf.mxu3 }
 0x1a4   : > { %1220 = vst [vmem:[%s2348_s19 + $0x330] sm:$0xff] %v820_v15 }
 0x1a5   : > { %1221 = vst [vmem:[%s2348_s19 + $0x338] sm:$0xff] %v945_v59 }
 0x1a8   : > { %v698_v16 = vpop.f32.mrf.mxu1  ;;  %v1073_v17 = vpop.f32.mrf.mxu0 }
 0x1a9   : > { %1224 = vst [vmem:[%s2348_s19 + $0x350] sm:$0xff] %v698_v16 }
 0x1aa   : > { %1227 = vst [vmem:[%s2348_s19 + $0x368] sm:$0xff] %v1073_v17 }
 0x1ab   : > { %v823_v1 = vpop.f32.mrf.mxu2  ;;  %v948_v18 = vpop.f32.mrf.mxu3 }
 0x1ac   : > { %1225 = vst [vmem:[%s2348_s19 + $0x358] sm:$0xff] %v823_v1 }
 0x1ad   : > { %1226 = vst [vmem:[%s2348_s19 + $0x360] sm:$0xff] %v948_v18 }
 0x1b0   : > { %v701_v10 = vpop.f32.mrf.mxu1  ;;  %v1076_v19 = vpop.f32.mrf.mxu0 }
 0x1b1   : > { %1229 = vst [vmem:[%s2348_s19 + $0x378] sm:$0xff] %v701_v10 }
 0x1b2   : > { %1232 = vst [vmem:[%s2348_s19 + $0x390] sm:$0xff] %v1076_v19 }
 0x1b3   : > { %v826_v20 = vpop.f32.mrf.mxu2  ;;  %v951_v21 = vpop.f32.mrf.mxu3 }
 0x1b4   : > { %1230 = vst [vmem:[%s2348_s19 + $0x380] sm:$0xff] %v826_v20 }
 0x1b5   : > { %1231 = vst [vmem:[%s2348_s19 + $0x388] sm:$0xff] %v951_v21 }
 0x1b8   : > { %v704_v27 = vpop.f32.mrf.mxu1  ;;  %v1079_v24 = vpop.f32.mrf.mxu0 }
 0x1b9   : > { %1234 = vst [vmem:[%s2348_s19 + $0x3a0] sm:$0xff] %v704_v27 }
 0x1ba   : > { %1237 = vst [vmem:[%s2348_s19 + $0x3b8] sm:$0xff] %v1079_v24 }
 0x1bb   : > { %v829_v33 = vpop.f32.mrf.mxu2  ;;  %v954_v25 = vpop.f32.mrf.mxu3 }
 0x1bc   : > { %1235 = vst [vmem:[%s2348_s19 + $0x3a8] sm:$0xff] %v829_v33 }
 0x1bd   : > { %1236 = vst [vmem:[%s2348_s19 + $0x3b0] sm:$0xff] %v954_v25 }
 0x1c0   : > { %v707_v40 = vpop.f32.mrf.mxu1  ;;  %v1082_v26 = vpop.f32.mrf.mxu0 }
 0x1c1   : > { %1239 = vst [vmem:[%s2348_s19 + $0x3c8] sm:$0xff] %v707_v40 }
 0x1c2   : > { %1242 = vst [vmem:[%s2348_s19 + $0x3e0] sm:$0xff] %v1082_v26 }
 0x1c3   : > { %v832_v29 = vpop.f32.mrf.mxu2  ;;  %v957_v3 = vpop.f32.mrf.mxu3 }
 0x1c4   : > { %1240 = vst [vmem:[%s2348_s19 + $0x3d0] sm:$0xff] %v832_v29 }
 0x1c5   : > { %1241 = vst [vmem:[%s2348_s19 + $0x3d8] sm:$0xff] %v957_v3 }
 0x1c8   : > { %v710_v50 = vpop.f32.mrf.mxu1  ;;  %v1085_v30 = vpop.f32.mrf.mxu0 }
 0x1c9   : > { %1244 = vst [vmem:[%s2348_s19 + $0x3f0] sm:$0xff] %v710_v50 }
 0x1ca   : > { %1247 = vst [vmem:[%s2348_s19 + $0x408] sm:$0xff] %v1085_v30 }
 0x1cb   : > { %v835_v34 = vpop.f32.mrf.mxu2  ;;  %v960_v35 = vpop.f32.mrf.mxu3 }
 0x1cc   : > { %1245 = vst [vmem:[%s2348_s19 + $0x3f8] sm:$0xff] %v835_v34 }
 0x1cd   : > { %1246 = vst [vmem:[%s2348_s19 + $0x400] sm:$0xff] %v960_v35 }
 0x1d0   : > { %v713_v54 = vpop.f32.mrf.mxu1  ;;  %v1088_v13 = vpop.f32.mrf.mxu0 }
 0x1d1   : > { %1249 = vst [vmem:[%s2348_s19 + $0x418] sm:$0xff] %v713_v54 }
 0x1d2   : > { %1252 = vst [vmem:[%s2348_s19 + $0x430] sm:$0xff] %v1088_v13 }
 0x1d3   : > { %v838_v36 = vpop.f32.mrf.mxu2  ;;  %v963_v37 = vpop.f32.mrf.mxu3 }
 0x1d4   : > { %1250 = vst [vmem:[%s2348_s19 + $0x420] sm:$0xff] %v838_v36 }
 0x1d5   : > { %1251 = vst [vmem:[%s2348_s19 + $0x428] sm:$0xff] %v963_v37 }
 0x1d8   : > { %v716_v58 = vpop.f32.mrf.mxu1  ;;  %v1091_v38 = vpop.f32.mrf.mxu0 }
 0x1d9   : > { %1254 = vst [vmem:[%s2348_s19 + $0x440] sm:$0xff] %v716_v58 }
 0x1da   : > { %1257 = vst [vmem:[%s2348_s19 + $0x458] sm:$0xff] %v1091_v38 }
 0x1db   : > { %v841_v31 = vpop.f32.mrf.mxu2  ;;  %v966_v39 = vpop.f32.mrf.mxu3 }
 0x1dc   : > { %1255 = vst [vmem:[%s2348_s19 + $0x448] sm:$0xff] %v841_v31 }
 0x1dd   : > { %1256 = vst [vmem:[%s2348_s19 + $0x450] sm:$0xff] %v966_v39 }
 0x1e0   : > { %v719_v0 = vpop.f32.mrf.mxu1  ;;  %v1094_v42 = vpop.f32.mrf.mxu0 }
 0x1e1   : > { %1259 = vst [vmem:[%s2348_s19 + $0x468] sm:$0xff] %v719_v0 }
 0x1e2   : > { %1262 = vst [vmem:[%s2348_s19 + $0x480] sm:$0xff] %v1094_v42 }
 0x1e3   : > { %v844_v44 = vpop.f32.mrf.mxu2  ;;  %v969_v43 = vpop.f32.mrf.mxu3 }
 0x1e4   : > { %1260 = vst [vmem:[%s2348_s19 + $0x470] sm:$0xff] %v844_v44 }
 0x1e5   : > { %1261 = vst [vmem:[%s2348_s19 + $0x478] sm:$0xff] %v969_v43 }
 0x1e8   : > { %v722_v23 = vpop.f32.mrf.mxu1  ;;  %v1097_v45 = vpop.f32.mrf.mxu0 }
 0x1e9   : > { %1264 = vst [vmem:[%s2348_s19 + $0x490] sm:$0xff] %v722_v23 }
 0x1ea   : > { %1267 = vst [vmem:[%s2348_s19 + $0x4a8] sm:$0xff] %v1097_v45 }
 0x1eb   : > { %v847_v46 = vpop.f32.mrf.mxu2  ;;  %v972_v47 = vpop.f32.mrf.mxu3 }
 0x1ec   : > { %1265 = vst [vmem:[%s2348_s19 + $0x498] sm:$0xff] %v847_v46 }
 0x1ed   : > { %1266 = vst [vmem:[%s2348_s19 + $0x4a0] sm:$0xff] %v972_v47 }
 0x1f0   : > { %v725_v60 = vpop.f32.mrf.mxu1  ;;  %v1100_v48 = vpop.f32.mrf.mxu0 }
 0x1f1   : > { %1269 = vst [vmem:[%s2348_s19 + $0x4b8] sm:$0xff] %v725_v60 }
 0x1f2   : > { %1272 = vst [vmem:[%s2348_s19 + $0x4d0] sm:$0xff] %v1100_v48 }
 0x1f3   : > { %v850_v49 = vpop.f32.mrf.mxu2  ;;  %v975_v52 = vpop.f32.mrf.mxu3 }
 0x1f4   : > { %1270 = vst [vmem:[%s2348_s19 + $0x4c0] sm:$0xff] %v850_v49 }
 0x1f5   : > { %1271 = vst [vmem:[%s2348_s19 + $0x4c8] sm:$0xff] %v975_v52 }
 0x1f8   : > { %v728_v11 = vpop.f32.mrf.mxu1  ;;  %v1103_v53 = vpop.f32.mrf.mxu0 }
 0x1f9   : > { %1274 = vst [vmem:[%s2348_s19 + $0x4e0] sm:$0xff] %v728_v11 }
 0x1fa   : > { %1277 = vst [vmem:[%s2348_s19 + $0x4f8] sm:$0xff] %v1103_v53 }
 0x1fb   : > { %v853_v56 = vpop.f32.mrf.mxu2  ;;  %v978_v57 = vpop.f32.mrf.mxu3 }
 0x1fc   : > { %1275 = vst [vmem:[%s2348_s19 + $0x4e8] sm:$0xff] %v853_v56 }
 0x1fd   : > { %1276 = vst [vmem:[%s2348_s19 + $0x4f0] sm:$0xff] %v978_v57 }
 0x200   : > { %v731_v28 = vpop.f32.mrf.mxu1  ;;  %v1106_v62 = vpop.f32.mrf.mxu0 }
 0x201   : > { %1279 = vst [vmem:[%s2348_s19 + $0x508] sm:$0xff] %v731_v28 }
 0x202   : > { %1282 = vst [vmem:[%s2348_s19 + $0x520] sm:$0xff] %v1106_v62 }
 0x203   : > { %v856_v4 = vpop.f32.mrf.mxu2  ;;  %v981_v63 = vpop.f32.mrf.mxu3 }
 0x204   : > { %1280 = vst [vmem:[%s2348_s19 + $0x510] sm:$0xff] %v856_v4 }
 0x205   : > { %1281 = vst [vmem:[%s2348_s19 + $0x518] sm:$0xff] %v981_v63 }
 0x208   : > { %v734_v41 = vpop.f32.mrf.mxu1  ;;  %v1109_v32 = vpop.f32.mrf.mxu0 }
 0x209   : > { %1284 = vst [vmem:[%s2348_s19 + $0x530] sm:$0xff] %v734_v41 }
 0x20a   : > { %1287 = vst [vmem:[%s2348_s19 + $0x548] sm:$0xff] %v1109_v32 }
 0x20b   : > { %v859_v2 = vpop.f32.mrf.mxu2  ;;  %v984_v6 = vpop.f32.mrf.mxu3 }
 0x20c   : > { %1285 = vst [vmem:[%s2348_s19 + $0x538] sm:$0xff] %v859_v2 }
 0x20d   : > { %1286 = vst [vmem:[%s2348_s19 + $0x540] sm:$0xff] %v984_v6 }
 0x210   : > { %v737_v51 = vpop.f32.mrf.mxu1  ;;  %v1112_v5 = vpop.f32.mrf.mxu0 }
 0x211   : > { %1289 = vst [vmem:[%s2348_s19 + $0x558] sm:$0xff] %v737_v51 }
 0x212   : > { %1292 = vst [vmem:[%s2348_s19 + $0x570] sm:$0xff] %v1112_v5 }
 0x213   : > { %v862_v7 = vpop.f32.mrf.mxu2  ;;  %v987_v8 = vpop.f32.mrf.mxu3 }
 0x214   : > { %1290 = vst [vmem:[%s2348_s19 + $0x560] sm:$0xff] %v862_v7 }
 0x215   : > { %1291 = vst [vmem:[%s2348_s19 + $0x568] sm:$0xff] %v987_v8 }
 0x218   : > { %v740_v55 = vpop.f32.mrf.mxu1  ;;  %v1115_v9 = vpop.f32.mrf.mxu0 }
 0x219   : > { %1294 = vst [vmem:[%s2348_s19 + $0x580] sm:$0xff] %v740_v55 }
 0x21a   : > { %1297 = vst [vmem:[%s2348_s19 + $0x598] sm:$0xff] %v1115_v9 }
 0x21b   : > { %v865_v22 = vpop.f32.mrf.mxu2  ;;  %v990_v12 = vpop.f32.mrf.mxu3 }
 0x21c   : > { %1295 = vst [vmem:[%s2348_s19 + $0x588] sm:$0xff] %v865_v22 }
 0x21d   : > { %1296 = vst [vmem:[%s2348_s19 + $0x590] sm:$0xff] %v990_v12 }
 0x21e   : > { %1804 = shalt.err (!%p1801_p10)
}
 0x21f   : > { %s1868_s20 = smov 640   ;;  %s1869_s29 = smov 3200  }
 0x220   : > { %s1870_s30 = smov 40  }
 0x221   : > { %1648 = dma.vmem_to_hbm [thread:$0]  (%p1942_p9), %s1314_s6, 23040, %s1316_s8, %s1299_s15, %s1868_s20, %s1869_s29, %s1870_s30  }
 0x222 PF: > { %p1662_p12 = scmp.ge.s32.totalorder %s1863_s17, 2  ;;  %s1330_s4 = sand.u32 1, %s1843_s12  }
 0x223   : > { %s1331_s18 = scalar_lea.sflag [#allocation4], %s1330_s4 }
 0x224   : > { %p1658_p13 = pnand %p1662_p12, %p1949_p11 }
 0x226   : > { %p1659_p0 = pneg %p1658_p13 }
 0x228   : > { %1838 = dma.done.wait (%p1659_p0), %s1331_s18, 23040  }
 0x229   : > { %1840 = vsyncadd (%p1659_p0), %s1331_s18, 4294944256  ;;  %s22_s17 = sadd.s32 1, %s1863_s17   ;;  %s2803_s25 = sld [smem:[#allocation11_spill]] }
 0x22a   : > { %p19_p1 = scmp.ge.s32.totalorder %s22_s17, 7   ;;  %s2804_s12 = smov %s1847_s13 }
 0x22b   : > { %s2805_s13 = smov %s1851_s14  ;;  %s2806_s14 = smov %s1947_s26 }
 0x22c   : > { %s2807_s15 = smov %s1859_s16  ;;  %21 = sbr.rel (!%p19_p1) target bundleno = 10 (0xa), region = 90 }
 0x22f   : > { %s2808_s16 = smov %s2803_s25 }
 0x231   :  { %1337 = vsyncpa [#allocation3], 1 }
 0x232   :  { %1339 = vsyncpa [#allocation3 + $0x1], 1 }
 0x233   :  { %1340 = vsyncpa [#allocation6], 1 }
 0x234   :  { %1342 = vsyncpa [#allocation6 + $0x1], 1 }
 0x235   :  { %1343 = vsyncpa [#allocation4], 1 }
 0x236   :  { %1345 = vsyncpa [#allocation4 + $0x1], 1 }

</bundles_post_ra>
